<compile_context>
chip_gen: v6e
topology: v6e:2x2x1
jax: 0.10.0
libtpu: 0.0.40
codegen_flags: <defaults>
</compile_context>

<pallas_src>
import functools

import jax
import jax.numpy as jnp
from jax import lax
from jax.experimental import pallas as pl
from jax.experimental.pallas import tpu as pltpu


# ----------------------------------------------------------------------------
# Pallas kernels
# ----------------------------------------------------------------------------
def _conv_mm_kernel(cols_ref, w_ref, b_ref, o_ref, *, neg_slope):
    """Batch-folded conv tile: (Cout,K)@(K,tile) + bias, optional LeakyReLU."""
    y = jnp.dot(w_ref[...], cols_ref[...], preferred_element_type=jnp.float32)
    y = y + b_ref[...]                                   # (Cout,1) -> (Cout,tile)
    if neg_slope != 1.0:                                 # trace-time constant
        y = jnp.where(y >= 0, y, neg_slope * y)
    o_ref[...] = y.astype(o_ref.dtype)


def _tail_kernel(cols4_ref, w4_ref, b4_ref,
                 wq_ref, bq_ref, wk_ref, bk_ref, wv_ref, bv_ref,
                 wlast_ref, gamma_ref, blast_ref, o_ref):
    """Fused l4 conv + LeakyReLU + Self_Attn + final 4x4 conv, one batch elem.

    cols4: (K4, 16) im2col of the l3 output; everything downstream is resident
    in VMEM.  N = 4*4 = 16 spatial positions.
    """
    # ---- l4: 4x4 stride-2 conv + LeakyReLU(0.1) --------------------------
    y4 = jnp.dot(w4_ref[...], cols4_ref[0], preferred_element_type=jnp.float32)
    y4 = y4 + b4_ref[...]
    x = jnp.where(y4 >= 0, y4, 0.1 * y4)                 # (C, N) f32
    xb = x.astype(jnp.bfloat16)

    # ---- Self_Attn (1x1 convs -> softmax(Q^T K) -> V @ attn^T) ------------
    q = jnp.dot(wq_ref[...], xb, preferred_element_type=jnp.float32) + bq_ref[...]
    k = jnp.dot(wk_ref[...], xb, preferred_element_type=jnp.float32) + bk_ref[...]
    v = jnp.dot(wv_ref[...], xb, preferred_element_type=jnp.float32) + bv_ref[...]
    # energy[i, j] = sum_c q[c, i] * k[c, j]   (transpose folded into dot_general)
    energy = lax.dot_general(q, k, (((0,), (0,)), ((), ())),
                             preferred_element_type=jnp.float32)      # (N, N)
    energy = energy - jnp.max(energy, axis=-1, keepdims=True)         # safe softmax
    p = jnp.exp(energy)
    attn = p * pl.reciprocal(jnp.sum(p, axis=-1, keepdims=True), approx=True)
    # out[c, i] = sum_j v[c, j] * attn[i, j]
    out = lax.dot_general(v, attn, (((1,), (1,)), ((), ())),
                          preferred_element_type=jnp.float32)         # (C, N)
    o = gamma_ref[0] * out + x

    # ---- last: Conv2d(C, 1, 4) on the 4x4 map == full contraction ---------
    val = jnp.sum(wlast_ref[...] * o) + blast_ref[0]
    o_ref[...] = jnp.reshape(val, (1, 1, 1))


# ----------------------------------------------------------------------------
# Host-side glue (im2col) + wrappers
# ----------------------------------------------------------------------------
def _im2col_batch_folded(x, kh, kw, stride, pad):
    """x: (B,Cin,H,W) -> cols (Cin*kh*kw, B*Ho*Wo), row order (ci, i, j)."""
    B, Cin, H, W = x.shape
    Ho = (H + 2 * pad - kh) // stride + 1
    Wo = (W + 2 * pad - kw) // stride + 1
    xp = jnp.pad(x, ((0, 0), (0, 0), (pad, pad), (pad, pad)))
    patches = [xp[:, :, i:i + Ho * stride:stride, j:j + Wo * stride:stride]
               for i in range(kh) for j in range(kw)]        # each (B,Cin,Ho,Wo)
    stk = jnp.stack(patches, axis=0)                         # (kh*kw,B,Cin,Ho,Wo)
    cols = stk.transpose(2, 0, 1, 3, 4).reshape(Cin * kh * kw, B * Ho * Wo)
    return cols, Ho, Wo


def conv2d_leaky_pallas(x, w, b, *, stride=2, pad=1, neg_slope=0.1,
                        out_dtype=jnp.bfloat16):
    """Conv2d(k=4) + LeakyReLU; batch folded into the lane axis, one call."""
    B, Cin, H, W = x.shape
    Cout, _, kh, kw = w.shape
    cols, Ho, Wo = _im2col_batch_folded(x, kh, kw, stride, pad)
    cols = cols.astype(jnp.bfloat16)
    w_mat = w.reshape(Cout, Cin * kh * kw).astype(jnp.bfloat16)
    b_col = b.reshape(Cout, 1).astype(jnp.float32)

    K = Cin * kh * kw
    Ntot = B * Ho * Wo
    # 2-way lane split when blocks stay 128-lane multiples (keeps both v7x TCs
    # busy); otherwise a single full-width block.
    n_blk = 2 if (Ntot % 256 == 0) else 1
    tile = Ntot // n_blk

    out = pl.pallas_call(
        functools.partial(_conv_mm_kernel, neg_slope=neg_slope),
        out_shape=jax.ShapeDtypeStruct((Cout, Ntot), out_dtype),
        grid=(n_blk,),
        in_specs=[
            pl.BlockSpec((K, tile), lambda n: (0, n)),
            pl.BlockSpec((Cout, K), lambda n: (0, 0)),
            pl.BlockSpec((Cout, 1), lambda n: (0, 0)),
        ],
        out_specs=pl.BlockSpec((Cout, tile), lambda n: (0, n)),
        compiler_params=pltpu.CompilerParams(dimension_semantics=("parallel",)),
    )(cols, w_mat, b_col)
    # (Cout, B*Ho*Wo) -> (B, Cout, Ho, Wo)
    return out.reshape(Cout, B, Ho, Wo).transpose(1, 0, 2, 3)


def tail_fused_pallas(x3, p):
    """Fused l4 -> Self_Attn -> last. x3: (B, C3, 8, 8). Returns (B,) f32."""
    B, C3, H, W = x3.shape
    w4 = p["l4_w"]
    C4, _, kh, kw = w4.shape            # (64, 32, 4, 4)
    Cq = p["attn_wq"].shape[0]

    # im2col for l4, kept per-batch: (B, C3*kh*kw, Ho*Wo) with Ho=Wo=4
    xp = jnp.pad(x3, ((0, 0), (0, 0), (1, 1), (1, 1)))
    Ho = (H + 2 - kh) // 2 + 1
    Wo = (W + 2 - kw) // 2 + 1
    N = Ho * Wo
    patches = [xp[:, :, i:i + Ho * 2:2, j:j + Wo * 2:2]
               for i in range(kh) for j in range(kw)]          # (B,C3,Ho,Wo)
    cols4 = (jnp.stack(patches, axis=0)
             .transpose(1, 2, 0, 3, 4)
             .reshape(B, C3 * kh * kw, N)
             .astype(jnp.bfloat16))
    K4 = C3 * kh * kw

    w4_mat = w4.reshape(C4, K4).astype(jnp.bfloat16)
    b4_col = p["l4_b"].reshape(C4, 1).astype(jnp.float32)
    wq = p["attn_wq"].astype(jnp.bfloat16)
    wk = p["attn_wk"].astype(jnp.bfloat16)
    wv = p["attn_wv"].astype(jnp.bfloat16)
    bq = p["attn_bq"].reshape(Cq, 1).astype(jnp.float32)
    bk = p["attn_bk"].reshape(Cq, 1).astype(jnp.float32)
    bv = p["attn_bv"].reshape(C4, 1).astype(jnp.float32)
    # last conv (Cout=1, k=4, valid) on the 4x4 map: weights as (C4, N) f32
    w_last = p["last_w"].reshape(C4, N).astype(jnp.float32)
    gamma = p["attn_gamma"].reshape(1).astype(jnp.float32)
    b_last = p["last_b"].reshape(1).astype(jnp.float32)

    out = pl.pallas_call(
        _tail_kernel,
        out_shape=jax.ShapeDtypeStruct((B, 1, 1), jnp.float32),
        grid=(B,),
        in_specs=[
            pl.BlockSpec((1, K4, N), lambda b: (b, 0, 0)),
            pl.BlockSpec((C4, K4), lambda b: (0, 0)),
            pl.BlockSpec((C4, 1), lambda b: (0, 0)),
            pl.BlockSpec((Cq, C4), lambda b: (0, 0)),
            pl.BlockSpec((Cq, 1), lambda b: (0, 0)),
            pl.BlockSpec((Cq, C4), lambda b: (0, 0)),
            pl.BlockSpec((Cq, 1), lambda b: (0, 0)),
            pl.BlockSpec((C4, C4), lambda b: (0, 0)),
            pl.BlockSpec((C4, 1), lambda b: (0, 0)),
            pl.BlockSpec((C4, N), lambda b: (0, 0)),
            pl.BlockSpec(memory_space=pltpu.MemorySpace.SMEM),   # gamma
            pl.BlockSpec(memory_space=pltpu.MemorySpace.SMEM),   # last bias
        ],
        out_specs=pl.BlockSpec((1, 1, 1), lambda b: (b, 0, 0)),
        compiler_params=pltpu.CompilerParams(dimension_semantics=("parallel",)),
    )(cols4, w4_mat, b4_col, wq, bq, wk, bk, wv, bv, w_last, gamma, b_last)
    return out.reshape(B)


# ----------------------------------------------------------------------------
# Parameter setup (deterministic, synthetic) — plain JAX glue
# ----------------------------------------------------------------------------
def spectral_norm(w, key, n_power_iterations=1, eps=1e-12):
    """Single-forward-pass SpectralNorm semantics (power iteration on W_mat)."""
    cout = w.shape[0]
    wm = w.reshape(cout, -1)
    u = jax.random.normal(key, (cout,), jnp.float32)
    u = u / (jnp.linalg.norm(u) + eps)
    v = None
    for _ in range(n_power_iterations):
        v = wm.T @ u
        v = v / (jnp.linalg.norm(v) + eps)
        u = wm @ v
        u = u / (jnp.linalg.norm(u) + eps)
    sigma = u @ (wm @ v)
    return w / sigma


def init_params(key, conv_dim=8):
    keys = jax.random.split(key, 32)
    ki = iter(range(32))

    def conv_w(cout, cin, k):
        return 0.05 * jax.random.normal(keys[next(ki)], (cout, cin, k, k), jnp.float32)

    def conv_b(cout):
        return 0.01 * jax.random.normal(keys[next(ki)], (cout,), jnp.float32)

    p = {}
    cd = conv_dim
    dims = [(3, cd), (cd, 2 * cd), (2 * cd, 4 * cd), (4 * cd, 8 * cd)]
    for idx, (cin, cout) in enumerate(dims, start=1):
        w = conv_w(cout, cin, 4)
        w = spectral_norm(w, keys[next(ki)])           # SpectralNorm wrapper
        p[f"l{idx}_w"] = w
        p[f"l{idx}_b"] = conv_b(cout)

    curr = 8 * cd
    # last: Conv2d(curr_dim, 1, 4)  (no spectral norm in the reference)
    p["last_w"] = conv_w(1, curr, 4)
    p["last_b"] = conv_b(1)

    # Self_Attn(in_dim = curr_dim): 1x1 convs stored as plain matrices
    cq = curr // 8
    p["attn_wq"] = 0.05 * jax.random.normal(keys[next(ki)], (cq, curr), jnp.float32)
    p["attn_bq"] = 0.01 * jax.random.normal(keys[next(ki)], (cq,), jnp.float32)
    p["attn_wk"] = 0.05 * jax.random.normal(keys[next(ki)], (cq, curr), jnp.float32)
    p["attn_bk"] = 0.01 * jax.random.normal(keys[next(ki)], (cq,), jnp.float32)
    p["attn_wv"] = 0.05 * jax.random.normal(keys[next(ki)], (curr, curr), jnp.float32)
    p["attn_bv"] = 0.01 * jax.random.normal(keys[next(ki)], (curr,), jnp.float32)
    p["attn_gamma"] = jnp.zeros((1,), jnp.float32)     # nn.Parameter(torch.zeros(1))
    return p


# ----------------------------------------------------------------------------
# Full forward
# ----------------------------------------------------------------------------
def discriminator_forward(p, x):
    out = conv2d_leaky_pallas(x, p["l1_w"], p["l1_b"])      # (B,  cd, 32, 32) bf16
    out = conv2d_leaky_pallas(out, p["l2_w"], p["l2_b"])    # (B, 2cd, 16, 16)
    out = conv2d_leaky_pallas(out, p["l3_w"], p["l3_b"])    # (B, 4cd,  8,  8)
    # l4 + Self_Attn + last fused in one Pallas kernel per batch element.
    # (attention map is computed in-VMEM but never written back — the
    #  reference forward discards it.)
    return tail_fused_pallas(out, p)                        # (B,)


if __name__ == "__main__":
    # image_size=64 so four stride-2 convs leave a 4x4 map for the final 4x4
    # conv; conv_dim shrunk 64 -> 8 (attention in_dim = conv_dim*8 = 64).
    B, image_size, conv_dim = 2, 64, 8
    x = jax.random.normal(jax.random.PRNGKey(0), (B, 3, image_size, image_size),
                          jnp.float32)
    params = init_params(jax.random.PRNGKey(1), conv_dim=conv_dim)

    out = discriminator_forward(params, x)
    out = jax.block_until_ready(out)
    assert out.shape == (B,), out.shape
    assert jnp.all(jnp.isfinite(out))
    print("KERNEL_OK")
</pallas_src>

<mosaic_0001>
module attributes {stable_mosaic.version = 11 : i64} {
  func.func @_conv_mm_kernel(%arg0: i32, %arg1: memref<48x1024xbf16, #tpu.memory_space<vmem>>, %arg2: memref<8x48xbf16, #tpu.memory_space<vmem>>, %arg3: memref<8x1xf32, #tpu.memory_space<vmem>>, %arg4: memref<8x1024xbf16, #tpu.memory_space<vmem>>) attributes {dimension_semantics = [#tpu.dimension_semantics<parallel>], iteration_bounds = array<i64: 2>, scalar_prefetch = 0 : i64, scratch_operands = 0 : i64, tpu.core_type = #tpu.core_type<tc>, window_params = [{transform_indices = @transform_0, window_bounds = array<i64: 48, 1024>}, {pipeline_mode = #tpu.pipeline_mode<synchronous>, transform_indices = @transform_1, window_bounds = array<i64: 8, 48>}, {pipeline_mode = #tpu.pipeline_mode<synchronous>, transform_indices = @transform_2, window_bounds = array<i64: 8, 1>}, {transform_indices = @transform_3, window_bounds = array<i64: 8, 1024>}]} {
    %c0 = arith.constant 0 : index
    %c0_0 = arith.constant 0 : index
    %0 = vector.load %arg2[%c0, %c0_0] : memref<8x48xbf16, #tpu.memory_space<vmem>>, vector<8x48xbf16>
    %c0_1 = arith.constant 0 : index
    %c0_2 = arith.constant 0 : index
    %1 = vector.load %arg1[%c0_1, %c0_2] : memref<48x1024xbf16, #tpu.memory_space<vmem>>, vector<48x1024xbf16>
    %cst = arith.constant dense<0.000000e+00> : vector<8x1024xf32>
    %2 = tpu.matmul %0, %1, %cst {dimension_numbers = #tpu.dot_dimension_numbers<[1], [0], [0], [1], [0, 0, 1, 1], [], []>} : vector<8x48xbf16>, vector<48x1024xbf16>, vector<8x1024xf32> -> vector<8x1024xf32>
    %c0_3 = arith.constant 0 : index
    %c0_4 = arith.constant 0 : index
    %3 = vector.load %arg3[%c0_3, %c0_4] : memref<8x1xf32, #tpu.memory_space<vmem>>, vector<8x1xf32>
    %4 = vector.broadcast %3 : vector<8x1xf32> to vector<8x1024xf32>
    %5 = arith.addf %2, %4 : vector<8x1024xf32>
    %cst_5 = arith.constant 0.000000e+00 : f32
    %6 = vector.broadcast %cst_5 : f32 to vector<8x1024xf32>
    %7 = arith.cmpf oge, %5, %6 : vector<8x1024xf32>
    %cst_6 = arith.constant 1.000000e-01 : f32
    %8 = vector.broadcast %cst_6 : f32 to vector<8x1024xf32>
    %9 = arith.mulf %8, %5 : vector<8x1024xf32>
    %10 = arith.select %7, %5, %9 : vector<8x1024xi1>, vector<8x1024xf32>
    %11 = arith.truncf %10 : vector<8x1024xf32> to vector<8x1024xbf16>
    %c0_7 = arith.constant 0 : index
    %c0_8 = arith.constant 0 : index
    %12 = vector.load %arg4[%c0_7, %c0_8] : memref<8x1024xbf16, #tpu.memory_space<vmem>>, vector<8x1024xbf16>
    tpu.vector_store %arg4[%c0_7, %c0_8], %11 {strides = array<i32>} : memref<8x1024xbf16, #tpu.memory_space<vmem>>, vector<8x1024xbf16>,
    return
  }
  func.func @transform_0(%arg0: i32) -> (i32, i32) {
    %c0_i32 = arith.constant 0 : i32
    %c0_i32_0 = arith.constant 0 : i32
    return %c0_i32, %arg0 : i32, i32
  }
  func.func @transform_1(%arg0: i32) -> (i32, i32) {
    %c0_i32 = arith.constant 0 : i32
    %c0_i32_0 = arith.constant 0 : i32
    %c0_i32_1 = arith.constant 0 : i32
    return %c0_i32, %c0_i32_0 : i32, i32
  }
  func.func @transform_2(%arg0: i32) -> (i32, i32) {
    %c0_i32 = arith.constant 0 : i32
    %c0_i32_0 = arith.constant 0 : i32
    %c0_i32_1 = arith.constant 0 : i32
    return %c0_i32, %c0_i32_0 : i32, i32
  }
  func.func @transform_3(%arg0: i32) -> (i32, i32) {
    %c0_i32 = arith.constant 0 : i32
    %c0_i32_0 = arith.constant 0 : i32
    return %c0_i32, %arg0 : i32, i32
  }
}

</mosaic_0001>

<bundles_post_ra>
// kernel: tpu_custom_call.1
= control target key start
LH: loop header
LB: loop body
LE: loop exit
PB: predicated region body
PF: predicated region fallthrough
CT: control target
= control target key end

     0   :  { %8 = vsyncpa [#allocation3], 0  ;;  %s1070_s0 = inlined_call_operand.hbm [shape: bf16[48,2048], index: 0, kind: input, shape index: {}]   ;;  %s1071_s1 = inlined_call_operand.vmem [shape: bf16[8,48], index: 1, kind: input, shape index: {}]   ;;  %s1072_s2 = inlined_call_operand.vmem [shape: f32[8,1], index: 2, kind: input, shape index: {}]   ;;  %s1073_s3 = inlined_call_operand.hbm [shape: bf16[8,2048], index: 3, kind: output, shape index: {}]  }
   0x1   :  { %10 = vsyncpa [#allocation3 + $0x1], 0 }
   0x2   :  { %11 = vsyncpa [#allocation4], 0 }
   0x3   :  { %13 = vsyncpa [#allocation4 + $0x1], 0  ;;  %s879_s12 = smov 0   ;;  %s881_s13 = smov 0  }
   0x4   :  { %s883_s14 = smov 0   ;;  %s885_s15 = smov 0  }
   0x5 LB: > { %s900_s16 = sadd.s32 4294967295, %s851_s15   ;;  %s656_s17 = sadd.s32 4294967294, %s851_s15   ;;  %s851_s15 = sphi %s885_s15, %s1088_s15   ;;  %s847_s14 = sphi %s883_s14, %s1087_s14   ;;  %s843_s13 = sphi %s881_s13, %s1086_s13   ;;  %s839_s12 = sphi %s879_s12, %s1085_s12  }
   0x6   : > { %s904_s18 = sadd.s32 1, %s851_s15   ;;  %s26_s19 = sadd.s32 1, %s847_s14 }
   0x7   : > { %s23_s20 = ssub.s32 %s851_s15, %s904_s18  ;;  %p33_p0 = scmp.ne.s32.totalorder %s847_s14, %s843_s13 }
   0x8   : > { %p24_p1 = scmp.eq.s32.totalorder %s23_s20, 0  ;;  %p34_p2 = scmp.eq.s32.totalorder %s851_s15, 0 }
   0x9   : > { %p39_p3 = scmp.ne.s32.totalorder %s843_s13, %s839_s12  ;;  %p40_p4 = scmp.eq.s32.totalorder %s900_s16, 0 }
   0xa   : > { %s916_s21 = scalar_select %p24_p1, %s847_s14, %s26_s19  }
   0xb   : > { %p35_p5 = por %p34_p2, %p33_p0  ;;  %p918_p6 = por %p40_p4, %p39_p3 }
   0xc   : > { %p105_p7 = scmp.eq.s32.totalorder %s900_s16, 1  ;;  %p111_p8 = scmp.eq.s32.totalorder %s656_s17, 1 }
   0xd   : > { %s1076_s22 = scalar_select %p918_p6, 1, 0 }
   0xe   : > { %p720_p10 = scmp.lt.s32.totalorder %s851_s15, 2  ;;  %p925_p11 = por %p105_p7, %p33_p0 }
   0xf   : > { %p929_p12 = por %p111_p8, %p39_p3  ;;  %s137_s25 = sand.u32 1, %s847_s14  }
  0x10   : > { %s1077_s23 = scalar_select %p925_p11, 1, 0 }
  0x11   : > { %s1078_s24 = scalar_select %p929_p12, 1, 0 }
  0x12   : > { %s700_s26 = sshll.u32 %s851_s15, 9  ;;  %s706_s27 = smul.u32 192, %s137_s25 }
  0x13   : > { %s938_s30 = scalar_lea.hbm %s1070_s0, %s700_s26  ;;  %p940_p13 = pnand %p720_p10, %p35_p5 }
  0x14   : > { %s141_s5 = scalar_lea.vmem [#allocation2], %s706_s27  ;;  %s947_s7 = scalar_lea.sflag [#allocation3], %s137_s25 }
  0x15   : > { %s148_s6 = sshll.u32 %s141_s5, 4  ;;  %s759_s8 = scalar_lea.hbm %s938_s30, 3072  ;;  %s944_s6 = int_to_ptr.vmem [resolvable:$true] %s148_s6 }
  0x16   : > { %p760_p1 = scmp.ne.s32.totalorder %s938_s30, %s759_s8  ;;  %p761_p2 = pneg %p940_p13 }
  0x17   : > { %s764_s11 = scalar_lea.hbm %s1070_s0, 6144  ;;  %p765_p5 = scmp.lt.s32.totalorder %s938_s30, %s1070_s0 }
  0x18   : > { %p762_p3 = pnand %p761_p2, %p760_p1  ;;  %p766_p7 = scmp.lt.s32.totalorder %s764_s11, %s759_s8 }
  0x1a   : > { %p763_p4 = pneg %p762_p3  ;;  %p767_p8 = por %p766_p7, %p765_p5 }
  0x1c   : > { %p768_p10 = pnand %p767_p8, %p763_p4 }
  0x1e   : > { %771 = shalt.err (!%p768_p10)
}
  0x1f   : > { %s772_s20 = scalar_lea.vmem %s944_s6, 3072  ;;  %s853_s25 = smov [#allocation2]  }
  0x20   : > { %p773_p9 = scmp.ne.s32.totalorder %s944_s6, %s772_s20  ;;  %s777_s26 = sshll.u32 %s853_s25, 4  ;;  %s778_s26 = int_to_ptr.vmem [resolvable:$false] %s777_s26 }
  0x21   : > { %s779_s27 = scalar_lea.vmem %s778_s26, 6144  ;;  %p780_p3 = scmp.lt.s32.totalorder %s944_s6, %s778_s26 }
  0x22   : > { %p775_p0 = pnand %p773_p9, %p761_p2  ;;  %p781_p12 = scmp.lt.s32.totalorder %s779_s27, %s772_s20 }
  0x24   : > { %p776_p1 = pneg %p775_p0  ;;  %p782_p11 = por %p781_p12, %p780_p3 }
  0x26   : > { %p783_p6 = pnand %p782_p11, %p776_p1 }
  0x28   : > { %786 = shalt.err (!%p783_p6)
}
  0x29   : > { %s854_s28 = smov 1024   ;;  %s855_s29 = smov 512  }
  0x2a   : > { %s856_s5 = smov 32   ;;  %p156_p9 = scmp.lt.s32.totalorder %s851_s15, 3 }
  0x2b   : > { %715 = dma.hbm_to_vmem [thread:$0]  (!%p940_p13), %s938_s30, 3072, %s944_s6, %s947_s7, %s854_s28, %s855_s29, %s856_s5  }
  0x2c   : > { %p1080_p0 = scmp.ge.s32.totalorder %s851_s15, 1 }
  0x2e   : > { %p157_p2 = pnand %p1080_p0, %p156_p9 }
  0x2f   : > { %s972_s8 = sand.u32 (!%p157_p2), 1, %s843_s13   ;;  %p1081_p6 = scmp.ne.s32.totalorder (!%p157_p2), %s1076_s22, 0 }
  0x30   : > { %160 = sbr.rel (%p157_p2) target bundleno = 298 (0x12a), region = 32  ;;  %s163_s10 = scalar_lea.sflag (!%p157_p2), [#allocation3], %s972_s8 }
  0x31   : > { %s707_s9 = smul.u32 (!%p157_p2), 192, %s972_s8 }
  0x33   : > { %s976_s11 = scalar_lea.vmem (!%p157_p2), [#allocation2], %s707_s9 }
  0x35   : > { %830 = dma.done.wait (%p1081_p6), %s163_s10, 3072  }
  0x36   : > { %832 = vsyncadd (%p1081_p6), %s163_s10, 4294964224  ;;  %v857_v0 = vmov 0   ;;  %v209_v1 = vld [vmem:[%s976_s11 + $0x80] sm:$0xff]  ;;  %v210_v3 = vld [vmem:[%s976_s11 + $0x88] sm:$0xff]  ;;  %vm343_vm0 = vcmask 392192   ;;  %s662_s7 = sshll.u32 %s972_s8, 5 }
  0x37   : > { %379 = vmatprep.mubr.bf16.mxu0 %v857_v0  ;;  %420 = vmatprep.mubr.bf16.mxu1 %v857_v0  ;;  %v213_v2 = vld [vmem:[%s976_s11 + $0xa0] sm:$0xff]  ;;  %v214_v5 = vld [vmem:[%s976_s11 + $0xa8] sm:$0xff]  ;;  %v211_v23 = vld [vmem:[%s976_s11 + $0x90] sm:$0xff]  ;;  %s1022_s17 = scalar_lea.vmem [#allocation5], %s662_s7  ;;  %s705_s19 = sshll.u32 %s900_s16, 9 }
  0x38   : > { %758 = vset.pattern.permute.xlu0 %v857_v0  ;;  %v680_v4 = vcombine.high %v209_v1, %v213_v2  ;;  %v679_v6 = vcombine.low %v209_v1, %v213_v2  ;;  %v201_v7 = vld [vmem:[%s976_s11 + $0x40] sm:$0xff]  ;;  %v682_v9 = vcombine.high %v210_v3, %v214_v5  ;;  %v681_v10 = vcombine.low %v210_v3, %v214_v5  ;;  %v202_v12 = vld [vmem:[%s976_s11 + $0x48] sm:$0xff]  ;;  %v215_v24 = vld [vmem:[%s976_s11 + $0xb0] sm:$0xff]  ;;  %s586_s20 = sshll.u32 %s1022_s17, 4  ;;  %s1031_s27 = scalar_lea.hbm %s1073_s3, %s705_s19  ;;  %s587_s20 = int_to_ptr.vmem [resolvable:$true] %s586_s20 }
  0x39   : > { %v205_v8 = vld [vmem:[%s976_s11 + $0x60] sm:$0xff]  ;;  %v206_v13 = vld [vmem:[%s976_s11 + $0x68] sm:$0xff]  ;;  %v212_v25 = vld [vmem:[%s976_s11 + $0x98] sm:$0xff]  ;;  %v684_v30 = vcombine.high %v211_v23, %v215_v24  ;;  %v683_v37 = vcombine.low %v211_v23, %v215_v24  ;;  %s572_s28 = scalar_lea.sflag [#allocation4], %s972_s8  ;;  %s787_s29 = scalar_lea.vmem %s587_s20, 512 }
  0x3a   : > { %v672_v11 = vcombine.high %v201_v7, %v205_v8  ;;  %v193_v14 = vld [vmem:[%s976_s11] sm:$0xff]  ;;  %357 = vmatprep.subr.bf16.mxu0 %v680_v4  ;;  %v674_v15 = vcombine.high %v202_v12, %v206_v13  ;;  %v194_v17 = vld [vmem:[%s976_s11 + $0x8] sm:$0xff]  ;;  %398 = vmatprep.subr.bf16.mxu1 %v682_v9  ;;  %v671_v19 = vcombine.low %v201_v7, %v205_v8  ;;  %v216_v26 = vld [vmem:[%s976_s11 + $0xb8] sm:$0xff]  ;;  %p788_p11 = scmp.ne.s32.totalorder %s587_s20, %s787_s29  ;;  %p1082_p12 = scmp.ne.s32.totalorder %s1077_s23, 0 }
  0x3b   : > { %v197_v16 = vld [vmem:[%s976_s11 + $0x20] sm:$0xff]  ;;  %v198_v18 = vld [vmem:[%s976_s11 + $0x28] sm:$0xff]  ;;  %358 = vmatpush1.bf16.msra.mxu0 %v679_v6  ;;  %399 = vmatpush1.bf16.msra.mxu1 %v681_v10  ;;  %v673_v20 = vcombine.low %v202_v12, %v206_v13  ;;  %v686_v31 = vcombine.high %v212_v25, %v216_v26  ;;  %v203_v32 = vld [vmem:[%s976_s11 + $0x50] sm:$0xff]  ;;  %v685_v38 = vcombine.low %v212_v25, %v216_v26  ;;  %s858_s16 = smov [#allocation5]  }
  0x3c   : > { %359 = vmatprep.subr.bf16.mxu0 %v672_v11  ;;  %v664_v21 = vcombine.high %v193_v14, %v197_v16  ;;  %400 = vmatprep.subr.bf16.mxu1 %v674_v15  ;;  %v666_v22 = vcombine.high %v194_v17, %v198_v18  ;;  %v663_v27 = vcombine.low %v193_v14, %v197_v16  ;;  %v217_v28 = vld [vmem:[%s1072_s2] sm:$0xff]  ;;  %v207_v33 = vld [vmem:[%s976_s11 + $0x70] sm:$0xff]  ;;  %v204_v34 = vld [vmem:[%s976_s11 + $0x58] sm:$0xff]  ;;  %p789_p13 = pnand %p788_p11, %p1082_p12  ;;  %s791_s5 = sshll.u32 %s858_s16, 4  ;;  %s792_s5 = int_to_ptr.vmem [resolvable:$false] %s791_s5 }
  0x3d   : > { %v665_v29 = vcombine.low %v194_v17, %v198_v18  ;;  %220 = vperm.xlu0 %758, %v217_v28   ;;  %v208_v35 = vld [vmem:[%s976_s11 + $0x78] sm:$0xff]  ;;  %v192_v36 = vld [vmem:[%s1071_s1] sm:$0xf]  ;;  %v676_v39 = vcombine.high %v203_v32, %v207_v33  ;;  %v195_v41 = vld [vmem:[%s976_s11 + $0x10] sm:$0xff]  ;;  %v675_v45 = vcombine.low %v203_v32, %v207_v33  ;;  %s793_s9 = scalar_lea.vmem %s792_s5, 1024  ;;  %p794_p5 = scmp.lt.s32.totalorder %s587_s20, %s792_s5 }
  0x3e   : > { %v678_v40 = vcombine.high %v204_v34, %v208_v35  ;;  %v199_v42 = vld [vmem:[%s976_s11 + $0x30] sm:$0xff]  ;;  %v196_v43 = vld [vmem:[%s976_s11 + $0x18] sm:$0xff]  ;;  %v677_v46 = vcombine.low %v204_v34, %v208_v35  ;;  %p790_p4 = pneg %p789_p13  ;;  %p795_p7 = scmp.lt.s32.totalorder %s793_s9, %s787_s29 }
  0x3f   : > { %360 = vmatpush1.bf16.msra.mxu0 %v671_v19  ;;  %401 = vmatpush1.bf16.msra.mxu1 %v673_v20  ;;  %v200_v44 = vld [vmem:[%s976_s11 + $0x38] sm:$0xff]  ;;  %v668_v47 = vcombine.high %v195_v41, %v199_v42  ;;  %v667_v49 = vcombine.low %v195_v41, %v199_v42 }
  0x40   : > { %361 = vmatprep.subr.bf16.mxu0 %v664_v21  ;;  %402 = vmatprep.subr.bf16.mxu1 %v666_v22  ;;  %v670_v48 = vcombine.high %v196_v43, %v200_v44  ;;  %v669_v50 = vcombine.low %v196_v43, %v200_v44  ;;  %p796_p8 = por %p795_p7, %p794_p5 }
  0x42   : > { %p797_p10 = pnand %p796_p8, %p790_p4 }
  0x43   : > { %362 = vmatpush1.bf16.msra.mxu0 %v663_v27  ;;  %403 = vmatpush1.bf16.msra.mxu1 %v665_v29 }
  0x44   : > { %439 = vmatprep.subr.bf16.mxu0 %v684_v30  ;;  %480 = vmatprep.subr.bf16.mxu1 %v686_v31 }
  0x46   : > { %687 = vmatmul.mubr.msk.bf16.vlgmr.msra.gmra.mxu0 %vm343_vm0, %v192_v36  ;;  %688 = vmatmul.mubr.msk.bf16.vlgmr.msra.gmra.mxu1 %vm343_vm0, %v192_v36 }
  0x47   : > { %440 = vmatpush1.bf16.msra.mxu0 %v683_v37  ;;  %481 = vmatpush1.bf16.msra.mxu1 %v685_v38 }
  0x48   : > { %441 = vmatprep.subr.bf16.mxu0 %v676_v39  ;;  %482 = vmatprep.subr.bf16.mxu1 %v678_v40 }
  0x49   : > { %461 = vmatprep.mubr.bf16.mxu0 %v857_v0  ;;  %502 = vmatprep.mubr.bf16.mxu1 %v857_v0 }
  0x4b   : > { %442 = vmatpush1.bf16.msra.mxu0 %v675_v45  ;;  %483 = vmatpush1.bf16.msra.mxu1 %v677_v46 }
  0x4c   : > { %443 = vmatprep.subr.bf16.mxu0 %v668_v47  ;;  %484 = vmatprep.subr.bf16.mxu1 %v670_v48 }
  0x4f   : > { %444 = vmatpush1.bf16.msra.mxu0 %v667_v49  ;;  %485 = vmatpush1.bf16.msra.mxu1 %v669_v50 }
  0x52   : > { %689 = vmatmul.mubr.msk.bf16.vlgmr.msra.gmra.mxu0 %vm343_vm0, %v192_v36  ;;  %690 = vmatmul.mubr.msk.bf16.vlgmr.msra.gmra.mxu1 %vm343_vm0, %v192_v36 }
  0xb8   : > { %v221_v51 = vpop.permute.xlu0 %220 }
 0x106   : > { %v381_v52 = vpop.f32.mrf.mxu0  ;;  %v422_v54 = vpop.f32.mrf.mxu1 }
 0x107   : > { %v382_v53 = vadd.f32 %v381_v52, %v221_v51  ;;  %v423_v55 = vadd.f32 %v422_v54, %v221_v51 }
 0x108   : > { %v383_v56 = vpop.f32.mrf.mxu0  ;;  %v424_v59 = vpop.f32.mrf.mxu1 }
 0x109   : > { %v519_v57 = vmul.f32 0.1, %v382_v53  ;;  %v384_v58 = vadd.f32 %v383_v56, %v221_v51  ;;  %vm511_vm1 = vcmp.ge.f32.partialorder %v382_v53, 0.0  ;;  %v521_v60 = vmul.f32 0.1, %v423_v55 }
 0x10a   : > { %v425_v61 = vadd.f32 %v424_v59, %v221_v51  ;;  %v385_v62 = vpop.f32.mrf.mxu0  ;;  %vm513_vm2 = vcmp.ge.f32.partialorder %v423_v55, 0.0  ;;  %v426_v0 = vpop.f32.mrf.mxu1 }
 0x10b   : > { %vm512_vm3 = vcmp.ge.f32.partialorder %v384_v58, 0.0  ;;  %v520_v63 = vmul.f32 0.1, %v384_v58  ;;  %v527_v3 = vsel %vm511_vm1, %v382_v53, %v519_v57  ;;  %v529_v6 = vsel %vm513_vm2, %v423_v55, %v521_v60 }
 0x10c   : > { %vm514_vm4 = vcmp.ge.f32.partialorder %v425_v61, 0.0  ;;  %v522_v1 = vmul.f32 0.1, %v425_v61  ;;  %v386_v2 = vpop.f32.mrf.mxu0  ;;  %v427_v5 = vpop.f32.mrf.mxu1 }
 0x10d   : > { %v528_v4 = vsel %vm512_vm3, %v384_v58, %v520_v63 }
 0x10e   : > { %v701_v7 = vpack.c.bf16 %v528_v4, %v527_v3  ;;  %v530_v8 = vsel %vm514_vm4, %v425_v61, %v522_v1 }
 0x10f   : > { %v702_v9 = vpack.c.bf16 %v530_v8, %v529_v6 }
 0x110   : > { %567 = vst [vmem:[%s1022_s17] sm:$0xff] %v701_v7 }
 0x111   : > { %568 = vst [vmem:[%s1022_s17 + $0x8] sm:$0xff] %v702_v9 }
 0x112   : > { %v463_v10 = vpop.f32.mrf.mxu0  ;;  %v504_v12 = vpop.f32.mrf.mxu1 }
 0x113   : > { %v464_v11 = vadd.f32 %v463_v10, %v221_v51  ;;  %v505_v13 = vadd.f32 %v504_v12, %v221_v51 }
 0x114   : > { %v465_v14 = vpop.f32.mrf.mxu0  ;;  %v506_v17 = vpop.f32.mrf.mxu1 }
 0x115   : > { %v523_v15 = vmul.f32 0.1, %v464_v11  ;;  %v466_v16 = vadd.f32 %v465_v14, %v221_v51  ;;  %vm515_vm5 = vcmp.ge.f32.partialorder %v464_v11, 0.0  ;;  %v525_v18 = vmul.f32 0.1, %v505_v13 }
 0x116   : > { %v507_v19 = vadd.f32 %v506_v17, %v221_v51  ;;  %v467_v20 = vpop.f32.mrf.mxu0  ;;  %vm517_vm6 = vcmp.ge.f32.partialorder %v505_v13, 0.0  ;;  %v508_v22 = vpop.f32.mrf.mxu1 }
 0x117   : > { %vm516_vm7 = vcmp.ge.f32.partialorder %v466_v16, 0.0  ;;  %v524_v21 = vmul.f32 0.1, %v466_v16  ;;  %v531_v25 = vsel %vm515_vm5, %v464_v11, %v523_v15  ;;  %v533_v28 = vsel %vm517_vm6, %v505_v13, %v525_v18 }
 0x118   : > { %vm518_vm8 = vcmp.ge.f32.partialorder %v507_v19, 0.0  ;;  %v526_v23 = vmul.f32 0.1, %v507_v19  ;;  %v468_v24 = vpop.f32.mrf.mxu0  ;;  %v509_v27 = vpop.f32.mrf.mxu1 }
 0x119   : > { %v532_v26 = vsel %vm516_vm7, %v466_v16, %v524_v21 }
 0x11a   : > { %v703_v29 = vpack.c.bf16 %v532_v26, %v531_v25  ;;  %v534_v30 = vsel %vm518_vm8, %v507_v19, %v526_v23 }
 0x11b   : > { %v704_v31 = vpack.c.bf16 %v534_v30, %v533_v28 }
 0x11c   : > { %569 = vst [vmem:[%s1022_s17 + $0x10] sm:$0xff] %v703_v29 }
 0x11d   : > { %570 = vst [vmem:[%s1022_s17 + $0x18] sm:$0xff] %v704_v31 }
 0x11e   : > { %800 = shalt.err (!%p797_p10)
}
 0x11f   : > { %s801_s10 = scalar_lea.hbm %s1031_s27, 512  ;;  %s805_s22 = scalar_lea.hbm %s1073_s3, 1024 }
 0x120   : > { %p802_p1 = scmp.ne.s32.totalorder %s1031_s27, %s801_s10  ;;  %p806_p0 = scmp.lt.s32.totalorder %s1031_s27, %s1073_s3 }
 0x121   : > { %p807_p2 = scmp.lt.s32.totalorder %s805_s22, %s801_s10 }
 0x122   : > { %p803_p3 = pnand %p802_p1, %p1082_p12 }
 0x123   : > { %p808_p6 = por %p807_p2, %p806_p0 }
 0x124   : > { %p804_p9 = pneg %p803_p3 }
 0x126   : > { %p809_p11 = pnand %p808_p6, %p804_p9 }
 0x128   : > { %812 = shalt.err (!%p809_p11)
}
 0x129   : > { %710 = dma.vmem_to_hbm [thread:$0]  (%p1082_p12), %s587_s20, 512, %s1031_s27, %s572_s28  }
 0x12a PF: > { %s598_s6 = sand.u32 1, %s839_s12   ;;  %p1083_p13 = scmp.ne.s32.totalorder %s1078_s24, 0 }
 0x12b   : > { %p1084_p4 = scmp.ge.s32.totalorder %s851_s15, 2  ;;  %s599_s7 = scalar_lea.sflag [#allocation4], %s598_s6 }
 0x12d   : > { %p717_p5 = pnand %p1084_p4, %p1083_p13 }
 0x12f   : > { %p718_p7 = pneg %p717_p5 }
 0x131   : > { %834 = dma.done.wait (%p718_p7), %s599_s7, 512  }
 0x132   : > { %836 = vsyncadd (%p718_p7), %s599_s7, 4294966784  ;;  %p16_p8 = scmp.ge.s32.totalorder %s904_s18, 4   ;;  %s1085_s12 = smov %s843_s13 }
 0x133   : > { %s1086_s13 = smov %s847_s14  ;;  %s1087_s14 = smov %s916_s21 }
 0x134   : > { %s1088_s15 = smov %s904_s18  ;;  %18 = sbr.rel (!%p16_p8) target bundleno = 5 (0x5), region = 77 }
 0x139   :  { %604 = vsyncpa [#allocation3], 1 }
 0x13a   :  { %606 = vsyncpa [#allocation3 + $0x1], 1 }
 0x13b   :  { %607 = vsyncpa [#allocation4], 1 }
 0x13c   :  { %609 = vsyncpa [#allocation4 + $0x1], 1 }

</bundles_post_ra>
